<compile_context>
chip_gen: v6e
topology: v6e:2x2x1
jax: 0.10.0
libtpu: 0.0.40
codegen_flags: <defaults>
</compile_context>

<pallas_src>
import jax
import jax.numpy as jnp
from jax.experimental import pallas as pl
from jax.experimental.pallas import tpu as pltpu

EPS = 1e-12

VMEM_LIMIT_BYTES = 48 * 1024 * 1024    # <= 48 MiB: safe on v7x (64 MiB/TC), roomy on v5e/v6e
VMEM_HEADROOM_BYTES = 6 * 1024 * 1024  # slack for compiler temporaries / spills


def _self_output_kernel(x_ref, res_ref, w_ref, p_ref, o_ref):
    # Dense: y = x @ W  (MXU matmul in native dtype, f32 accumulation).
    y = jnp.dot(x_ref[...], w_ref[...], preferred_element_type=jnp.float32)

    # Bias (row 0 of packed params, f32) + residual add in f32.
    # TODO(synk): dropout is identity here (eval mode); training-mode dropout
    # would use pltpu.prng_seed + pltpu.prng_random_bits to build the mask.
    h = y + p_ref[0:1, :] + res_ref[...].astype(jnp.float32)

    # BERTLayerNorm (TF style: epsilon inside the square root), f32 stats,
    # single reduction pass: E[h] and E[h^2] over the same h.
    inv_h = 1.0 / h.shape[-1]
    mean = jnp.sum(h, axis=-1, keepdims=True) * inv_h
    mean_sq = jnp.sum(h * h, axis=-1, keepdims=True) * inv_h
    var = jnp.maximum(mean_sq - mean * mean, 0.0)     # guard tiny cancellation
    h_norm = (h - mean) * jax.lax.rsqrt(var + EPS)    # rsqrt -> EUP slot

    # Affine epilogue: gamma (row 1), beta (row 2), f32.
    o_ref[...] = (p_ref[1:2, :] * h_norm + p_ref[2:3, :]).astype(o_ref.dtype)


def _plan_tiles(M, H, act_itemsize, out_itemsize, resident_bytes, *, tm_max=2048):
    """Pick row tile tm (multiple of 8) and padded row count (multiple of tm).

    Streaming VMEM per row: x + residual tiles (double-buffered), out tile
    (double-buffered), plus ~2 f32 [tm, H] temporaries for the LN epilogue.
    """
    per_row = (2 * (2 * act_itemsize + out_itemsize) + 2 * 4) * H
    budget = VMEM_LIMIT_BYTES - VMEM_HEADROOM_BYTES - resident_bytes
    budget = max(budget, 8 * per_row)
    tm_fit = max(8, (budget // per_row) // 8 * 8)
    tm = min(max(8, (tm_max // 8) * 8), tm_fit)
    # Keep >= 2 grid steps whenever M allows it (megacore sharding + pipelining).
    if M > 8:
        half = (((M + 1) // 2) + 7) // 8 * 8
        tm = min(tm, half)
    tm = max(tm, 8)
    m_pad = ((M + tm - 1) // tm) * tm
    return tm, m_pad


def bert_self_output(hidden_states, input_tensor, w, b, gamma, beta, *,
                     tm_max=2048, cast_streams_to_bf16=False):
    """hidden_states, input_tensor: [B, S, H]; w: [H_in, H_out] (x @ w layout);
    b, gamma, beta: [H]."""
    B, S, H = hidden_states.shape
    M = B * S
    out_dtype = hidden_states.dtype

    x2d = hidden_states.reshape(M, H)
    r2d = input_tensor.reshape(M, H)
    if cast_streams_to_bf16:
        # Halves x/res HBM traffic and keeps v5e's MXU on the bf16 fast path;
        # accumulation and LN statistics remain f32 inside the kernel.
        x2d = x2d.astype(jnp.bfloat16)
        r2d = r2d.astype(jnp.bfloat16)
        w = w.astype(jnp.bfloat16)

    # Pack bias / gamma / beta into one (3, H) f32 operand so LN statistics and
    # the affine epilogue stay f32 even for bf16 activations.
    params = jnp.stack(
        [b.astype(jnp.float32), gamma.astype(jnp.float32), beta.astype(jnp.float32)],
        axis=0,
    )

    act_itemsize = jnp.dtype(x2d.dtype).itemsize
    out_itemsize = jnp.dtype(out_dtype).itemsize
    w_bytes = H * H * jnp.dtype(w.dtype).itemsize
    # Resident constants (conservatively assume double-buffered): weight + params.
    resident_bytes = 2 * w_bytes + 2 * 8 * max(H, 128) * 4

    tm, m_pad = _plan_tiles(M, H, act_itemsize, out_itemsize, resident_bytes,
                            tm_max=tm_max)

    if m_pad != M:
        pad = m_pad - M
        x2d = jnp.pad(x2d, ((0, pad), (0, 0)))
        r2d = jnp.pad(r2d, ((0, pad), (0, 0)))

    flops = 2 * m_pad * H * H
    bytes_accessed = int(
        m_pad * H * (2 * act_itemsize + out_itemsize) + w_bytes + params.size * 4
    )

    out = pl.pallas_call(
        _self_output_kernel,
        out_shape=jax.ShapeDtypeStruct((m_pad, H), out_dtype),
        grid_spec=pltpu.PrefetchScalarGridSpec(
            num_scalar_prefetch=0,
            grid=(m_pad // tm,),
            in_specs=[
                pl.BlockSpec((tm, H), lambda i: (i, 0)),   # x tile
                pl.BlockSpec((tm, H), lambda i: (i, 0)),   # residual tile
                pl.BlockSpec((H, H), lambda i: (0, 0)),    # weight (resident)
                pl.BlockSpec((3, H), lambda i: (0, 0)),    # packed bias/gamma/beta (f32)
            ],
            out_specs=pl.BlockSpec((tm, H), lambda i: (i, 0)),
        ),
        compiler_params=pltpu.CompilerParams(
            dimension_semantics=("parallel",),   # megacore-shard the row axis
            vmem_limit_bytes=VMEM_LIMIT_BYTES,
        ),
        cost_estimate=pl.CostEstimate(
            flops=flops, transcendentals=0, bytes_accessed=bytes_accessed,
        ),
    )(x2d, r2d, w, params)

    if m_pad != M:
        out = out[:M]
    return out.reshape(B, S, H)


def _reference(hidden_states, input_tensor, w, b, gamma, beta):
    y = hidden_states.astype(jnp.float32) @ w.astype(jnp.float32) + b
    h = y + input_tensor.astype(jnp.float32)
    u = jnp.mean(h, axis=-1, keepdims=True)
    s = jnp.mean((h - u) ** 2, axis=-1, keepdims=True)
    hn = (h - u) / jnp.sqrt(s + EPS)
    return (gamma * hn + beta).astype(hidden_states.dtype)


if __name__ == "__main__":
    key = jax.random.PRNGKey(0)
    B, S, H = 2, 8, 32  # batch, seq, hidden (toy shapes; real BERT H=768/1024)

    k1, k2, k3, k4, k5, k6 = jax.random.split(key, 6)
    hidden_states = jax.random.normal(k1, (B, S, H), dtype=jnp.float32)
    input_tensor = jax.random.normal(k2, (B, S, H), dtype=jnp.float32)

    # nn.Linear: weight [H_out, H_in], bias [H_out]; store pre-transposed so
    # the kernel computes x @ W.
    w_linear = jax.random.normal(k3, (H, H), dtype=jnp.float32) * 0.02  # [H_out, H_in]
    b_linear = jax.random.normal(k4, (H,), dtype=jnp.float32) * 0.02
    w = w_linear.T  # [H_in, H_out]
    gamma = 1.0 + 0.1 * jax.random.normal(k5, (H,), dtype=jnp.float32)
    beta = 0.1 * jax.random.normal(k6, (H,), dtype=jnp.float32)

    out = bert_self_output(hidden_states, input_tensor, w, b_linear, gamma, beta)
    out = jax.block_until_ready(out)

    ref = _reference(hidden_states, input_tensor, w, b_linear, gamma, beta)
    assert out.shape == (B, S, H)
    assert jnp.allclose(out, ref, atol=1e-5, rtol=1e-5), "mismatch vs reference"

    print("KERNEL_OK")
</pallas_src>

<mosaic_0001>
module attributes {stable_mosaic.version = 11 : i64} {
  func.func @_self_output_kernel(%arg0: i32, %arg1: memref<8x32xf32, #tpu.memory_space<vmem>>, %arg2: memref<8x32xf32, #tpu.memory_space<vmem>>, %arg3: memref<32x32xf32, #tpu.memory_space<vmem>>, %arg4: memref<3x32xf32, #tpu.memory_space<vmem>>, %arg5: memref<8x32xf32, #tpu.memory_space<vmem>>) attributes {dimension_semantics = [#tpu.dimension_semantics<parallel>], iteration_bounds = array<i64: 2>, scalar_prefetch = 0 : i64, scratch_operands = 0 : i64, tpu.core_type = #tpu.core_type<tc>, window_params = [{transform_indices = @transform_0, window_bounds = array<i64: 8, 32>}, {transform_indices = @transform_1, window_bounds = array<i64: 8, 32>}, {pipeline_mode = #tpu.pipeline_mode<synchronous>, transform_indices = @transform_2, window_bounds = array<i64: 32, 32>}, {pipeline_mode = #tpu.pipeline_mode<synchronous>, transform_indices = @transform_3, window_bounds = array<i64: 3, 32>}, {transform_indices = @transform_4, window_bounds = array<i64: 8, 32>}]} {
    %c0 = arith.constant 0 : index
    %c0_0 = arith.constant 0 : index
    %0 = vector.load %arg1[%c0, %c0_0] : memref<8x32xf32, #tpu.memory_space<vmem>>, vector<8x32xf32>
    %c0_1 = arith.constant 0 : index
    %c0_2 = arith.constant 0 : index
    %1 = vector.load %arg3[%c0_1, %c0_2] : memref<32x32xf32, #tpu.memory_space<vmem>>, vector<32x32xf32>
    %cst = arith.constant dense<0.000000e+00> : vector<8x32xf32>
    %2 = tpu.matmul %0, %1, %cst {dimension_numbers = #tpu.dot_dimension_numbers<[1], [0], [0], [1], [0, 0, 1, 1], [], []>} : vector<8x32xf32>, vector<32x32xf32>, vector<8x32xf32> -> vector<8x32xf32>
    %c0_3 = arith.constant 0 : index
    %c0_4 = arith.constant 0 : index
    %3 = vector.load %arg4[%c0_3, %c0_4] : memref<3x32xf32, #tpu.memory_space<vmem>>, vector<1x32xf32>
    %4 = vector.broadcast %3 : vector<1x32xf32> to vector<8x32xf32>
    %5 = arith.addf %2, %4 : vector<8x32xf32>
    %c0_5 = arith.constant 0 : index
    %c0_6 = arith.constant 0 : index
    %6 = vector.load %arg2[%c0_5, %c0_6] : memref<8x32xf32, #tpu.memory_space<vmem>>, vector<8x32xf32>
    %7 = arith.addf %5, %6 : vector<8x32xf32>
    %cst_7 = arith.constant dense<0.000000e+00> : vector<8xf32>
    %8 = vector.multi_reduction <add>, %7, %cst_7 [1] : vector<8x32xf32> to vector<8xf32>
    %9 = vector.shape_cast %8 : vector<8xf32> to vector<8x1xf32>
    %cst_8 = arith.constant 3.125000e-02 : f32
    %10 = vector.broadcast %cst_8 : f32 to vector<8x1xf32>
    %11 = arith.mulf %9, %10 : vector<8x1xf32>
    %12 = arith.mulf %7, %7 : vector<8x32xf32>
    %cst_9 = arith.constant dense<0.000000e+00> : vector<8xf32>
    %13 = vector.multi_reduction <add>, %12, %cst_9 [1] : vector<8x32xf32> to vector<8xf32>
    %14 = vector.shape_cast %13 : vector<8xf32> to vector<8x1xf32>
    %cst_10 = arith.constant 3.125000e-02 : f32
    %15 = vector.broadcast %cst_10 : f32 to vector<8x1xf32>
    %16 = arith.mulf %14, %15 : vector<8x1xf32>
    %17 = arith.mulf %11, %11 : vector<8x1xf32>
    %18 = arith.subf %16, %17 : vector<8x1xf32>
    %cst_11 = arith.constant 0.000000e+00 : f32
    %19 = vector.broadcast %cst_11 : f32 to vector<8x1xf32>
    %20 = arith.maximumf %18, %19 : vector<8x1xf32>
    %21 = vector.broadcast %11 : vector<8x1xf32> to vector<8x32xf32>
    %22 = arith.subf %7, %21 : vector<8x32xf32>
    %cst_12 = arith.constant 9.99999996E-13 : f32
    %23 = vector.broadcast %cst_12 : f32 to vector<8x1xf32>
    %24 = arith.addf %20, %23 : vector<8x1xf32>
    %25 = math.rsqrt %24 : vector<8x1xf32>
    %26 = vector.broadcast %25 : vector<8x1xf32> to vector<8x32xf32>
    %27 = arith.mulf %22, %26 : vector<8x32xf32>
    %c1 = arith.constant 1 : index
    %c0_13 = arith.constant 0 : index
    %28 = vector.load %arg4[%c1, %c0_13] : memref<3x32xf32, #tpu.memory_space<vmem>>, vector<1x32xf32>
    %29 = vector.broadcast %28 : vector<1x32xf32> to vector<8x32xf32>
    %30 = arith.mulf %29, %27 : vector<8x32xf32>
    %c2 = arith.constant 2 : index
    %c0_14 = arith.constant 0 : index
    %31 = vector.load %arg4[%c2, %c0_14] : memref<3x32xf32, #tpu.memory_space<vmem>>, vector<1x32xf32>
    %32 = vector.broadcast %31 : vector<1x32xf32> to vector<8x32xf32>
    %33 = arith.addf %30, %32 : vector<8x32xf32>
    %c0_15 = arith.constant 0 : index
    %c0_16 = arith.constant 0 : index
    %34 = vector.load %arg5[%c0_15, %c0_16] : memref<8x32xf32, #tpu.memory_space<vmem>>, vector<8x32xf32>
    tpu.vector_store %arg5[%c0_15, %c0_16], %33 {strides = array<i32>} : memref<8x32xf32, #tpu.memory_space<vmem>>, vector<8x32xf32>,
    return
  }
  func.func @transform_0(%arg0: i32) -> (i32, i32) {
    %c0_i32 = arith.constant 0 : i32
    %c0_i32_0 = arith.constant 0 : i32
    return %arg0, %c0_i32 : i32, i32
  }
  func.func @transform_1(%arg0: i32) -> (i32, i32) {
    %c0_i32 = arith.constant 0 : i32
    %c0_i32_0 = arith.constant 0 : i32
    return %arg0, %c0_i32 : i32, i32
  }
  func.func @transform_2(%arg0: i32) -> (i32, i32) {
    %c0_i32 = arith.constant 0 : i32
    %c0_i32_0 = arith.constant 0 : i32
    %c0_i32_1 = arith.constant 0 : i32
    return %c0_i32, %c0_i32_0 : i32, i32
  }
  func.func @transform_3(%arg0: i32) -> (i32, i32) {
    %c0_i32 = arith.constant 0 : i32
    %c0_i32_0 = arith.constant 0 : i32
    %c0_i32_1 = arith.constant 0 : i32
    return %c0_i32, %c0_i32_0 : i32, i32
  }
  func.func @transform_4(%arg0: i32) -> (i32, i32) {
    %c0_i32 = arith.constant 0 : i32
    %c0_i32_0 = arith.constant 0 : i32
    return %arg0, %c0_i32 : i32, i32
  }
}

</mosaic_0001>

<bundles_post_ra>
// kernel: tpu_custom_call.1
= control target key start
LH: loop header
LB: loop body
LE: loop exit
PB: predicated region body
PF: predicated region fallthrough
CT: control target
= control target key end

     0   :  { %s1000_s0 = inlined_call_operand.hbm [shape: f32[16,32], index: 0, kind: input, shape index: {}]   ;;  %s1001_s1 = inlined_call_operand.hbm [shape: f32[16,32], index: 1, kind: input, shape index: {}]   ;;  %s1002_s2 = inlined_call_operand.hbm [shape: f32[32,32], index: 2, kind: input, shape index: {}]   ;;  %s1003_s3 = inlined_call_operand.vmem [shape: f32[3,32], index: 3, kind: input, shape index: {}]   ;;  %s1004_s4 = inlined_call_operand.hbm [shape: f32[16,32], index: 4, kind: output, shape index: {}]  }
   0x1   :  { %1009 = sst [smem:[#allocation13_spill]] %s1002_s2 }
   0x2   :  { %9 = vsyncpa [#allocation3], 0 }
   0x3   :  { %11 = vsyncpa [#allocation3 + $0x1], 0 }
   0x4   :  { %12 = vsyncpa [#allocation6], 0 }
   0x5   :  { %14 = vsyncpa [#allocation6 + $0x1], 0 }
   0x6   :  { %15 = vsyncpa [#allocation4], 0 }
   0x7   :  { %17 = vsyncpa [#allocation4 + $0x1], 0  ;;  %s789_s15 = smov 0   ;;  %s791_s16 = smov 0  }
   0x8   :  { %s793_s17 = smov 0   ;;  %s795_s18 = smov 0  }
   0x9 LB: > { %s810_s19 = sadd.s32 4294967295, %s754_s18   ;;  %s495_s20 = sadd.s32 4294967294, %s754_s18   ;;  %s754_s18 = sphi %s795_s18, %s1028_s18   ;;  %s750_s17 = sphi %s793_s17, %s1027_s17   ;;  %s746_s16 = sphi %s791_s16, %s1026_s16   ;;  %s742_s15 = sphi %s789_s15, %s1025_s15  }
   0xa   : > { %p43_p0 = scmp.ne.s32.totalorder %s746_s16, %s742_s15  ;;  %p1005_p1 = scmp.eq.s32.totalorder %s810_s19, 0 }
   0xb   : > { %p141_p3 = scmp.eq.s32.totalorder %s495_s20, 1  ;;  %p496_p5 = scmp.ge.s32.totalorder %s754_s18, 1 }
   0xc   : > { %p819_p4 = por %p1005_p1, %p43_p0  ;;  %p148_p7 = scmp.lt.s32.totalorder %s754_s18, 3 }
   0xd   : > { %p824_p6 = por %p141_p3, %p43_p0  ;;  %s756_s24 = smov [#allocation7]  }
   0xe   : > { %s1010_s21 = scalar_select %p819_p4, 1, 0 }
   0xf   : > { %s1011_s22 = scalar_select %p824_p6, 1, 0 }
  0x10   : > { %p829_p8 = pnand %p496_p5, %p148_p7  ;;  %s160_s25 = sshll.u32 %s756_s24, 4  ;;  %s161_s25 = int_to_ptr.vmem [resolvable:$true] %s160_s25 }
  0x11   : > { %s843_s27 = sadd.s32 1, %s754_s18   ;;  %s30_s28 = sadd.s32 1, %s750_s17 }
  0x12   : > { %s1012_s23 = scalar_select %p829_p8, 1, 0 }
  0x13   : > { %p542_p9 = pneg %p829_p8  ;;  %s27_s29 = ssub.s32 %s754_s18, %s843_s27 }
  0x14   : > { %s611_s30 = scalar_lea.vmem %s161_s25, 512  ;;  %p619_p5 = scmp.lt.s32.totalorder %s161_s25, %s161_s25 }
  0x15   : > { %p838_p11 = pnand %p542_p9, %p1005_p1  ;;  %p612_p13 = scmp.ne.s32.totalorder %s161_s25, %s611_s30 }
  0x16   : > { %p620_p7 = scmp.lt.s32.totalorder %s611_s30, %s611_s30 }
  0x17   : > { %p602_p12 = pneg %p838_p11 }
  0x18   : > { %p621_p10 = por %p620_p7, %p619_p5 }
  0x19   : > { %p614_p0 = pnand %p612_p13, %p602_p12 }
  0x1b   : > { %p615_p3 = pneg %p614_p0 }
  0x1d   : > { %p622_p2 = pnand %p621_p10, %p615_p3 }
  0x1f   : > { %625 = shalt.err (!%p622_p2)
}
  0x20   : > { %s757_s5 = smov 128   ;;  %s758_s6 = smov 8  }
  0x21   : > { %s1014_s2 = sld [smem:[#allocation13_spill]]  ;;  %p28_p9 = scmp.eq.s32.totalorder %s27_s29, 0 }
  0x22   : > { %p37_p12 = scmp.ne.s32.totalorder %s750_s17, %s746_s16  ;;  %p38_p10 = scmp.eq.s32.totalorder %s754_s18, 0 }
  0x23   : > { %p558_p2 = scmp.lt.s32.totalorder %s754_s18, 2  ;;  %p1015_p0 = scmp.eq.s32.totalorder %s810_s19, 1 }
  0x24   : > { %s860_s9 = scalar_select %p28_p9, %s750_s17, %s30_s28  }
  0x25   : > { %p39_p13 = por %p38_p10, %p37_p12  ;;  %p864_p3 = por %p1015_p0, %p37_p12 }
  0x26   : > { %s177_s11 = sand.u32 1, %s750_s17   ;;  %s500_s12 = sshll.u32 %s754_s18, 7 }
  0x27   : > { %545 = dma.hbm_to_vmem [thread:$0]  (!%p838_p11), %s1014_s2, 512, %s161_s25, [#allocation6], %s757_s5, %s757_s5, %s758_s6  }
  0x28   : > { %s1016_s10 = scalar_select %p864_p3, 1, 0 }
  0x29   : > { %s870_s13 = sshll.u32 %s177_s11, 3  ;;  %s875_s24 = scalar_lea.hbm %s1000_s0, %s500_s12 }
  0x2a   : > { %s181_s25 = scalar_lea.vmem [#allocation2], %s870_s13  ;;  %p878_p11 = pnand %p558_p2, %p39_p13 }
  0x2b   : > { %s188_s26 = sshll.u32 %s181_s25, 4  ;;  %s885_s5 = scalar_lea.hbm %s1001_s1, %s500_s12  ;;  %s189_s26 = int_to_ptr.vmem [resolvable:$true] %s188_s26 }
  0x2c   : > { %s178_s6 = scalar_lea.sflag [#allocation3], %s177_s11  ;;  %s626_s7 = scalar_lea.hbm %s875_s24, 128 }
  0x2d   : > { %p627_p5 = scmp.ne.s32.totalorder %s875_s24, %s626_s7  ;;  %p628_p7 = pneg %p878_p11 }
  0x2e   : > { %s631_s20 = scalar_lea.hbm %s1000_s0, 256  ;;  %p632_p10 = scmp.lt.s32.totalorder %s875_s24, %s1000_s0 }
  0x2f   : > { %p629_p9 = pnand %p628_p7, %p627_p5  ;;  %p633_p2 = scmp.lt.s32.totalorder %s631_s20, %s626_s7 }
  0x31   : > { %p630_p12 = pneg %p629_p9  ;;  %p634_p13 = por %p633_p2, %p632_p10 }
  0x33   : > { %p635_p0 = pnand %p634_p13, %p630_p12 }
  0x35   : > { %638 = shalt.err (!%p635_p0)
}
  0x36   : > { %s639_s11 = scalar_lea.vmem %s189_s26, 128  ;;  %s759_s12 = smov [#allocation2]  }
  0x37   : > { %p640_p1 = scmp.ne.s32.totalorder %s189_s26, %s639_s11  ;;  %s644_s29 = sshll.u32 %s759_s12, 4  ;;  %s645_s29 = int_to_ptr.vmem [resolvable:$false] %s644_s29 }
  0x38   : > { %s646_s30 = scalar_lea.vmem %s645_s29, 256  ;;  %p647_p9 = scmp.lt.s32.totalorder %s189_s26, %s645_s29 }
  0x39   : > { %p642_p6 = pnand %p640_p1, %p628_p7  ;;  %p648_p3 = scmp.lt.s32.totalorder %s646_s30, %s639_s11 }
  0x3b   : > { %p643_p5 = pneg %p642_p6  ;;  %p649_p4 = por %p648_p3, %p647_p9 }
  0x3d   : > { %p650_p8 = pnand %p649_p4, %p643_p5 }
  0x3f   : > { %653 = shalt.err (!%p650_p8)
}
  0x40   : > { %549 = dma.hbm_to_vmem [thread:$0]  (!%p878_p11), %s875_s24, 128, %s189_s26, %s178_s6  }
  0x41   : > { %s195_s2 = sand.u32 1, %s754_s18   ;;  %s199_s7 = scalar_lea.vmem [#allocation5], %s870_s13 }
  0x42   : > { %s206_s8 = sshll.u32 %s199_s7, 4  ;;  %s196_s14 = scalar_lea.sflag [#allocation6], %s195_s2  ;;  %s207_s8 = int_to_ptr.vmem [resolvable:$true] %s206_s8 }
  0x43   : > { %s654_s20 = scalar_lea.hbm %s885_s5, 128  ;;  %s659_s12 = scalar_lea.hbm %s1001_s1, 256 }
  0x44   : > { %p655_p1 = scmp.ne.s32.totalorder %s885_s5, %s654_s20  ;;  %p660_p8 = scmp.lt.s32.totalorder %s885_s5, %s1001_s1 }
  0x45   : > { %p661_p3 = scmp.lt.s32.totalorder %s659_s12, %s654_s20 }
  0x46   : > { %p657_p4 = pnand %p655_p1, %p628_p7 }
  0x47   : > { %p662_p12 = por %p661_p3, %p660_p8 }
  0x48   : > { %p658_p6 = pneg %p657_p4 }
  0x4a   : > { %p663_p10 = pnand %p662_p12, %p658_p6 }
  0x4c   : > { %666 = shalt.err (!%p663_p10)
}
  0x4d   : > { %s667_s13 = scalar_lea.vmem %s207_s8, 128  ;;  %s760_s24 = smov [#allocation5]  }
  0x4e   : > { %p668_p2 = scmp.ne.s32.totalorder %s207_s8, %s667_s13  ;;  %s672_s26 = sshll.u32 %s760_s24, 4  ;;  %s673_s26 = int_to_ptr.vmem [resolvable:$false] %s672_s26 }
  0x4f   : > { %s674_s6 = scalar_lea.vmem %s673_s26, 256  ;;  %p675_p5 = scmp.lt.s32.totalorder %s207_s8, %s673_s26 }
  0x50   : > { %p670_p13 = pnand %p668_p2, %p628_p7  ;;  %p676_p9 = scmp.lt.s32.totalorder %s674_s6, %s667_s13 }
  0x52   : > { %p671_p0 = pneg %p670_p13  ;;  %p677_p1 = por %p676_p9, %p675_p5 }
  0x54   : > { %p678_p4 = pnand %p677_p1, %p671_p0 }
  0x56   : > { %681 = shalt.err (!%p678_p4)
}
  0x57   : > { %552 = dma.hbm_to_vmem [thread:$0]  (!%p878_p11), %s885_s5, 128, %s207_s8, %s196_s14  }
  0x58   : > { %p1018_p6 = scmp.ne.s32.totalorder %s1012_s23, 0 }
  0x59   : > { %s930_s2 = sand.u32 (!%p1018_p6), 1, %s746_s16   ;;  %p1019_p7 = scmp.ne.s32.totalorder (!%p1018_p6), %s1010_s21, 0 }
  0x5a   : > { %215 = sbr.rel (%p1018_p6) target bundleno = 492 (0x1ec), region = 36  ;;  %s933_s7 = sshll.u32 (!%p1018_p6), %s930_s2, 3 }
  0x5b   : > { %s218_s20 = scalar_lea.sflag (!%p1018_p6), [#allocation3], %s930_s2  ;;  %s221_s25 = scalar_lea.vmem (!%p1018_p6), [#allocation2], %s933_s7 }
  0x5f   : > { %725 = dma.done.wait (%p1019_p7), %s218_s20, 128  }
  0x60   : > { %727 = vsyncadd (%p1019_p7), %s218_s20, 4294967168  ;;  %s226_s23 = sand.u32 1, %s810_s19   ;;  %s230_s5 = scalar_lea.vmem [#allocation5], %s933_s7 }
  0x61   : > { %s227_s28 = scalar_lea.sflag [#allocation6], %s226_s23 }
  0x62   : > { %729 = dma.done.wait (%p1019_p7), %s227_s28, 128  }
  0x63   : > { %731 = vsyncadd (%p1019_p7), %s227_s28, 4294967168  ;;  %p1020_p11 = scmp.eq.s32.totalorder %s810_s19, 0 }
  0x65   : > { %733 = dma.done.wait (%p1020_p11), [#allocation6], 512   ;;  %p1021_p8 = pmov %p1020_p11 }
  0x66   : > { %v761_v0 = vmov 0.0   ;;  %vm762_vm0 = vmmov 0   ;;  %v268_v1 = vld [vmem:[#allocation7 + $0x18] sm:$0xff]  ;;  %v267_v2 = vld [vmem:[#allocation7 + $0x10] sm:$0xff]  ;;  %v266_v3 = vld [vmem:[#allocation7 + $0x8] sm:$0xff]  ;;  %vm274_vm1 = vcmask 261120  }
  0x67   : > { %735 = vsyncadd (%p1021_p8), [#allocation6], 4294966784  ;;  %521 = vmatprep.subr.mxu0 %v761_v0  ;;  %529 = vmatprep.mubr.msk.f32.mxu0 %vm762_vm0, %v761_v0  ;;  %v265_v4 = vld [vmem:[#allocation7] sm:$0xff]  ;;  %v348_v8 = vld [vmem:[%s230_s5] sm:$0xff]  ;;  %s513_s30 = sshll.u32 %s810_s19, 7  ;;  %s263_s13 = scalar_lea.vmem [#allocation8], %s933_s7 }
  0x68   : > { %522 = vmatpush3.msra.mxu0 %v268_v1  ;;  %v264_v5 = vld [vmem:[%s221_s25] sm:$0xff]  ;;  %s393_s24 = sshll.u32 %s263_s13, 4  ;;  %s391_s20 = scalar_lea.hbm %s1004_s4, %s513_s30  ;;  %s394_s24 = int_to_ptr.vmem [resolvable:$true] %s393_s24 }
  0x69   : > { %523 = vmatprep.subr.mxu0 %v761_v0  ;;  %v508_v6 = vld [vmem:[%s1003_s3] ss:$0 sm:$0xff]  ;;  %v510_v25 = vld [vmem:[%s1003_s3 + $0x1] ss:$0 sm:$0xff]  ;;  %v511_v27 = vld [vmem:[%s1003_s3 + $0x2] ss:$0 sm:$0xff] }
  0x6a   : > { %524 = vmatpush3.msra.mxu0 %v267_v2  ;;  %s380_s25 = scalar_lea.sflag [#allocation4], %s930_s2  ;;  %s682_s23 = scalar_lea.vmem %s394_s24, 128 }
  0x6b   : > { %525 = vmatprep.subr.mxu0 %v761_v0  ;;  %p683_p3 = scmp.ne.s32.totalorder %s394_s24, %s682_s23  ;;  %p1022_p12 = scmp.ne.s32.totalorder %s1016_s10, 0 }
  0x6c   : > { %526 = vmatpush3.msra.mxu0 %v266_v3  ;;  %s763_s28 = smov [#allocation8]  }
  0x6d   : > { %527 = vmatprep.subr.mxu0 %v761_v0  ;;  %p684_p10 = pnand %p683_p3, %p1022_p12  ;;  %s686_s5 = sshll.u32 %s763_s28, 4  ;;  %s687_s5 = int_to_ptr.vmem [resolvable:$false] %s686_s5 }
  0x6e   : > { %528 = vmatpush3.msra.mxu0 %v265_v4  ;;  %s688_s19 = scalar_lea.vmem %s687_s5, 256  ;;  %p689_p13 = scmp.lt.s32.totalorder %s394_s24, %s687_s5 }
  0x6f   : > { %530 = vmatmul.mubr.msk.f32.vlgmr.msra.gmra.mxu0 %vm274_vm1, %v264_v5  ;;  %p685_p2 = pneg %p684_p10  ;;  %p690_p0 = scmp.lt.s32.totalorder %s688_s19, %s682_s23 }
  0x71   : > { %p691_p5 = por %p690_p0, %p689_p13 }
  0x73   : > { %p692_p9 = pnand %p691_p5, %p685_p2 }
 0x12f   : > { %v344_v7 = vpop.f32.mrf.mxu0 }
 0x130   : > { %v345_v9 = vadd.f32 %v508_v6, %v344_v7 }
 0x131   : > { %v531_v10 = vpop.f32.mrf.mxu0 }
 0x132   : > { %v349_v11 = vadd.f32 %v348_v8, %v345_v9 }
 0x134   : > { %v350_v12 = vsel %vm274_vm1, %v349_v11, 0.0  ;;  %v354_v13 = vmul.f32 %v349_v11, %v349_v11 }
 0x135   : > { %351 = vadd.xlane.f32.xlu0 %v350_v12 }
 0x136   : > { %v355_v14 = vsel %vm274_vm1, %v354_v13, 0.0 }
 0x139   : > { %356 = vadd.xlane.f32.xlu0 %v355_v14 }
 0x1be   : > { %v352_v15 = vpop.xlane.xlu0 %351 }
 0x1bf   : > { %v353_v16 = vmul.f32 0.03125, %v352_v15 }
 0x1c1   : > { %v359_v18 = vmul.f32 %v353_v16, %v353_v16  ;;  %v362_v23 = vsub.f32 %v349_v11, %v353_v16 }
 0x1c2   : > { %v357_v17 = vpop.xlane.xlu0 %356 }
 0x1c3   : > { %v358_v19 = vmul.f32 0.03125, %v357_v17 }
 0x1c5   : > { %v360_v20 = vsub.f32 %v358_v19, %v359_v18 }
 0x1c7   : > { %v361_v21 = vmax.f32 %v360_v20, 0.0 }
 0x1c9   : > { %v363_v22 = vadd.f32 1e-12, %v361_v21 }
 0x1cb   : > { %598 = vrsqrt.f32 %v363_v22 }
 0x1d8   : > { %v599_v24 = vpop.eup %598 }
 0x1d9   : > { %v365_v26 = vmul.f32 %v599_v24, %v362_v23 }
 0x1db   : > { %v371_v28 = vmul.f32 %v510_v25, %v365_v26 }
 0x1dd   : > { %v377_v29 = vadd.f32 %v511_v27, %v371_v28 }
 0x1df   : > { %378 = vst.msk [vmem:[%s263_s13] sm:$0xff] %vm274_vm1, %v377_v29 }
 0x1e0   : > { %695 = shalt.err (!%p692_p9)
}
 0x1e1   : > { %s696_s7 = scalar_lea.hbm %s391_s20, 128  ;;  %s700_s8 = scalar_lea.hbm %s1004_s4, 256 }
 0x1e2   : > { %p697_p1 = scmp.ne.s32.totalorder %s391_s20, %s696_s7  ;;  %p701_p7 = scmp.lt.s32.totalorder %s391_s20, %s1004_s4 }
 0x1e3   : > { %p702_p11 = scmp.lt.s32.totalorder %s700_s8, %s696_s7 }
 0x1e4   : > { %p698_p4 = pnand %p697_p1, %p1022_p12 }
 0x1e5   : > { %p703_p8 = por %p702_p11, %p701_p7 }
 0x1e6   : > { %p699_p6 = pneg %p698_p4 }
 0x1e8   : > { %p704_p3 = pnand %p703_p8, %p699_p6 }
 0x1ea   : > { %707 = shalt.err (!%p704_p3)
}
 0x1eb   : > { %540 = dma.vmem_to_hbm [thread:$0]  (%p1022_p12), %s394_s24, 128, %s391_s20, %s380_s25  }
 0x1ec PF: > { %s405_s12 = sand.u32 1, %s742_s15   ;;  %p1023_p10 = scmp.ne.s32.totalorder %s1011_s22, 0 }
 0x1ed   : > { %p1024_p2 = scmp.ge.s32.totalorder %s754_s18, 2  ;;  %s406_s29 = scalar_lea.sflag [#allocation4], %s405_s12 }
 0x1ef   : > { %p554_p13 = pnand %p1024_p2, %p1023_p10 }
 0x1f1   : > { %p555_p0 = pneg %p554_p13 }
 0x1f3   : > { %737 = dma.done.wait (%p555_p0), %s406_s29, 128  }
 0x1f4   : > { %739 = vsyncadd (%p555_p0), %s406_s29, 4294967168  ;;  %p20_p5 = scmp.ge.s32.totalorder %s843_s27, 4   ;;  %s1025_s15 = smov %s746_s16 }
 0x1f5   : > { %s1026_s16 = smov %s750_s17  ;;  %s1027_s17 = smov %s860_s9 }
 0x1f6   : > { %s1028_s18 = smov %s843_s27  ;;  %22 = sbr.rel (!%p20_p5) target bundleno = 9 (0x9), region = 98 }
 0x1fb   :  { %411 = vsyncpa [#allocation3], 1 }
 0x1fc   :  { %413 = vsyncpa [#allocation3 + $0x1], 1 }
 0x1fd   :  { %414 = vsyncpa [#allocation6], 1 }
 0x1fe   :  { %416 = vsyncpa [#allocation6 + $0x1], 1 }
 0x1ff   :  { %417 = vsyncpa [#allocation4], 1 }
 0x200   :  { %419 = vsyncpa [#allocation4 + $0x1], 1 }

</bundles_post_ra>
